<compile_context>
chip_gen: v6e
topology: v6e:2x2x1
jax: 0.10.0
libtpu: 0.0.40
codegen_flags: <defaults>
</compile_context>

<pallas_src>
import functools

import jax
import jax.numpy as jnp
from jax import lax
from jax.experimental import pallas as pl
from jax.experimental.pallas import tpu as pltpu


# ----------------------------------------------------------------------------
# Pallas kernel: in-kernel im2col (9 static lane-offset taps of the flattened
# halo'd strip) + 9 accumulating MXU matmuls + bias + LeakyReLU(0.2).
# ----------------------------------------------------------------------------
def _conv3x3_lrelu_kernel(w_ref, b_ref, x_ref, o_ref, *, wp):
    # w_ref: (9, Cout, Cin)    per-tap conv weights (compute dtype)
    # b_ref: (Cout, 1)         bias, f32
    # x_ref: (1, 1, Cin, Lp)   flattened padded strip, Lp = (TH+3)*wp
    # o_ref: (1, 1, Cout, Lv)  flattened output strip, Lv = TH*wp (lane-dense)
    cout = o_ref.shape[2]
    lv = o_ref.shape[3]
    x = x_ref[0, 0]                                     # (Cin, Lp)
    acc = jnp.zeros((cout, lv), dtype=jnp.float32)
    for t in range(9):                                  # static unroll: 9 taps
        kh, kw = divmod(t, 3)
        off = kh * wp + kw                              # static lane offset
        tap = x[:, off:off + lv]                        # (Cin, Lv)
        acc = acc + jnp.dot(w_ref[t], tap, preferred_element_type=jnp.float32)
    acc = acc + b_ref[...]                              # bias (lane broadcast)
    acc = jnp.where(acc > 0, acc, 0.2 * acc)            # LeakyReLU(0.2)
    o_ref[0, 0] = acc.astype(o_ref.dtype)


def _pick_strip_rows(h_out, w_pad, n_batch, target_lanes=8192):
    """Output rows per spatial strip.

    Targets ~target_lanes output lanes per grid step (amortizes per-step
    overhead) and forces >= 2 strips when batch == 1 so both v7x TensorCores
    get work.  Ragged remainders are handled by a padded tail strip.
    """
    th = max(1, min(h_out, target_lanes // max(w_pad, 1)))
    if n_batch == 1 and h_out >= 2:
        th = min(th, -(-h_out // 2))                    # ceil(h/2): >=2 strips
    return th


def _vmem_limit_bytes():
    try:
        cap = int(pltpu.get_tpu_info().vmem_capacity_bytes)
    except Exception:
        cap = 128 * 1024 * 1024
    # ~48 MiB on v7x (64 MiB physical VMEM); 64 MiB on v5e/v6e (128 MiB).
    return min(64 * 1024 * 1024, max(32 * 1024 * 1024, (cap * 3) // 4))


# ----------------------------------------------------------------------------
# Forward: unshuffle + pad + halo'd row strips (bf16), then the Pallas kernel.
# ----------------------------------------------------------------------------
def down_block_forward(x_nchw, w_oihw, bias, down_factor, *,
                       compute_dtype=jnp.bfloat16, out_dtype=None,
                       strip_rows=None, target_lanes=8192):
    N, C, Hr, Wr = x_nchw.shape
    r = down_factor
    if Hr % r != 0 or Wr % r != 0:
        raise ValueError(f"spatial dims ({Hr}x{Wr}) must be divisible by "
                         f"down_factor={r} (PixelUnshuffle requirement)")
    H, W = Hr // r, Wr // r
    Cin = C * r * r                          # effective conv in-channels
    if Cin >= 512:
        # TODO(synk): grouped 3x3 conv + pointwise conv branch not implemented.
        raise NotImplementedError(
            "DownBlock grouped-conv branch (>=512 effective in_channels)")
    Cout = w_oihw.shape[0]
    assert w_oihw.shape == (Cout, Cin, 3, 3)
    out_dtype = x_nchw.dtype if out_dtype is None else out_dtype

    # --- pixel unshuffle; cast EARLY so later passes move compute_dtype -----
    xs = x_nchw.reshape(N, C, H, r, W, r)
    xs = jnp.transpose(xs, (0, 1, 3, 5, 2, 4)).reshape(N, Cin, H, W)
    xs = xs.astype(compute_dtype)

    # --- padded row strips with a 3-row bottom halo --------------------------
    Wp = W + 2
    TH = strip_rows if strip_rows is not None else _pick_strip_rows(
        H, Wp, N, target_lanes)
    TH = max(1, min(TH, H))
    S = -(-H // TH)                          # cdiv: padded tail strip
    Hp = S * TH + 3                          # 1 top pad + S*TH rows + 2 halo
    xp = jnp.pad(xs, ((0, 0), (0, 0), (1, Hp - H - 1), (1, 1)))
    strips = jnp.stack(
        [xp[:, :, s * TH:s * TH + TH + 3, :] for s in range(S)], axis=1)
    Lp = (TH + 3) * Wp
    Lv = TH * Wp
    strips = strips.reshape(N, S, Cin, Lp)   # contiguous merge -> free reshape

    # --- weights: (Cout, Cin, 3, 3) -> (9, Cout, Cin), tap t = kh*3 + kw -----
    w_taps = jnp.transpose(w_oihw, (2, 3, 0, 1)).reshape(9, Cout, Cin)
    w_taps = w_taps.astype(compute_dtype)
    b2d = bias.reshape(Cout, 1).astype(jnp.float32)

    kernel = functools.partial(_conv3x3_lrelu_kernel, wp=Wp)
    y = pl.pallas_call(
        kernel,
        out_shape=jax.ShapeDtypeStruct((N, S, Cout, Lv), out_dtype),
        grid=(N, S),
        in_specs=[
            pl.BlockSpec((9, Cout, Cin), lambda n, s: (0, 0, 0)),
            pl.BlockSpec((Cout, 1), lambda n, s: (0, 0)),
            pl.BlockSpec((1, 1, Cin, Lp), lambda n, s: (n, s, 0, 0)),
        ],
        out_specs=pl.BlockSpec((1, 1, Cout, Lv), lambda n, s: (n, s, 0, 0)),
        compiler_params=pltpu.CompilerParams(
            dimension_semantics=("parallel", "parallel"),
            vmem_limit_bytes=_vmem_limit_bytes()),
    )(w_taps, b2d, strips)

    # (N, S, Cout, TH*Wp) -> (N, Cout, H, W): drop the 2 padded columns per
    # row and any padded tail rows (small output-side relayout only).
    y = y.reshape(N, S, Cout, TH, Wp)
    y = jnp.transpose(y, (0, 2, 1, 3, 4)).reshape(N, Cout, S * TH, Wp)
    return y[:, :, :H, :W]


# ----------------------------------------------------------------------------
# Pure-JAX reference (correctness cross-check).
# ----------------------------------------------------------------------------
def pixel_unshuffle_nchw(x, r):
    N, C, Hr, Wr = x.shape
    H, W = Hr // r, Wr // r
    x = x.reshape(N, C, H, r, W, r)
    x = jnp.transpose(x, (0, 1, 3, 5, 2, 4))
    return x.reshape(N, C * r * r, H, W)


def down_block_ref(x_nchw, w_oihw, bias, down_factor):
    x = pixel_unshuffle_nchw(x_nchw, down_factor)
    y = lax.conv_general_dilated(
        x, w_oihw, window_strides=(1, 1), padding=((1, 1), (1, 1)),
        dimension_numbers=("NCHW", "OIHW", "NCHW"))
    y = y + bias[None, :, None, None]
    return jnp.where(y > 0, y, 0.2 * y)


if __name__ == "__main__":
    # Module config (small): in_channels=4, out_channels=8, down_factor=2
    # -> effective conv in_channels = 4 * 2**2 = 16 < 512 -> single Conv2d.
    in_channels, out_channels, down_factor = 4, 8, 2
    eff_in = in_channels * down_factor ** 2                 # 16

    key = jax.random.PRNGKey(0)
    kx, kw, kb, kx2 = jax.random.split(key, 4)
    N, Hr, Wr = 2, 16, 16
    x = jax.random.normal(kx, (N, in_channels, Hr, Wr), jnp.float32)
    w = jax.random.normal(kw, (out_channels, eff_in, 3, 3), jnp.float32) * 0.1
    b = jax.random.normal(kb, (out_channels,), jnp.float32) * 0.1

    y_ref = down_block_ref(x, w, b, down_factor)

    # f32 operands: structurally exact vs the reference conv.
    fwd_f32 = jax.jit(functools.partial(
        down_block_forward, down_factor=down_factor, compute_dtype=jnp.float32))
    y32 = fwd_f32(x, w, b)
    jax.block_until_ready(y32)
    assert y32.shape == (N, out_channels, Hr // down_factor, Wr // down_factor)
    assert jnp.allclose(y32, y_ref, atol=1e-4, rtol=1e-4)

    # bf16 operands, f32 accumulate (native MXU rate); loose tolerance.
    fwd_bf16 = jax.jit(functools.partial(
        down_block_forward, down_factor=down_factor, compute_dtype=jnp.bfloat16))
    y16 = fwd_bf16(x, w, b)
    jax.block_until_ready(y16)
    assert y16.shape == y_ref.shape
    assert jnp.allclose(y16, y_ref, atol=2e-2, rtol=2e-2)

    # Multi-strip + ragged-tail path: batch 1 (forces >=2 strips) with
    # strip_rows=3 not dividing H=8, exercising the padded tail strip.
    x1 = jax.random.normal(kx2, (1, in_channels, Hr, Wr), jnp.float32)
    y1_ref = down_block_ref(x1, w, b, down_factor)
    fwd_rag = jax.jit(functools.partial(
        down_block_forward, down_factor=down_factor,
        compute_dtype=jnp.float32, strip_rows=3))
    y1 = fwd_rag(x1, w, b)
    jax.block_until_ready(y1)
    assert y1.shape == y1_ref.shape
    assert jnp.allclose(y1, y1_ref, atol=1e-4, rtol=1e-4)

    print("KERNEL_OK")
</pallas_src>

<mosaic_0001>
module attributes {stable_mosaic.version = 11 : i64} {
  func.func @_conv3x3_lrelu_kernel(%arg0: i32, %arg1: i32, %arg2: memref<9x8x16xf32, #tpu.memory_space<vmem>>, %arg3: memref<8x1xf32, #tpu.memory_space<vmem>>, %arg4: memref<1x1x16x110xf32, #tpu.memory_space<vmem>>, %arg5: memref<1x1x8x80xf32, #tpu.memory_space<vmem>>) attributes {dimension_semantics = [#tpu.dimension_semantics<parallel>, #tpu.dimension_semantics<parallel>], iteration_bounds = array<i64: 2, 1>, scalar_prefetch = 0 : i64, scratch_operands = 0 : i64, tpu.core_type = #tpu.core_type<tc>, window_params = [{pipeline_mode = #tpu.pipeline_mode<synchronous>, transform_indices = @transform_0, window_bounds = array<i64: 9, 8, 16>}, {pipeline_mode = #tpu.pipeline_mode<synchronous>, transform_indices = @transform_1, window_bounds = array<i64: 8, 1>}, {transform_indices = @transform_2, window_bounds = array<i64: 1, 1, 16, 110>}, {transform_indices = @transform_3, window_bounds = array<i64: 1, 1, 8, 80>}]} {
    %c0 = arith.constant 0 : index
    %c0_0 = arith.constant 0 : index
    %c0_1 = arith.constant 0 : index
    %c0_2 = arith.constant 0 : index
    %0 = vector.load %arg4[%c0, %c0_0, %c0_1, %c0_2] : memref<1x1x16x110xf32, #tpu.memory_space<vmem>>, vector<1x1x16x110xf32>
    %1 = vector.shape_cast %0 : vector<1x1x16x110xf32> to vector<16x110xf32>
    %cst = arith.constant 0.000000e+00 : f32
    %2 = vector.broadcast %cst : f32 to vector<8x80xf32>
    %3 = vector.extract_strided_slice %1 {offsets = [0, 0], sizes = [16, 80], strides = [1, 1]} : vector<16x110xf32> to vector<16x80xf32>
    %c0_3 = arith.constant 0 : index
    %c0_4 = arith.constant 0 : index
    %c0_5 = arith.constant 0 : index
    %4 = vector.load %arg2[%c0_3, %c0_4, %c0_5] : memref<9x8x16xf32, #tpu.memory_space<vmem>>, vector<1x8x16xf32>
    %5 = vector.shape_cast %4 : vector<1x8x16xf32> to vector<8x16xf32>
    %cst_6 = arith.constant dense<0.000000e+00> : vector<8x80xf32>
    %6 = tpu.matmul %5, %3, %cst_6 {dimension_numbers = #tpu.dot_dimension_numbers<[1], [0], [0], [1], [0, 0, 1, 1], [], []>} : vector<8x16xf32>, vector<16x80xf32>, vector<8x80xf32> -> vector<8x80xf32>
    %7 = arith.addf %2, %6 : vector<8x80xf32>
    %8 = vector.extract_strided_slice %1 {offsets = [0, 1], sizes = [16, 80], strides = [1, 1]} : vector<16x110xf32> to vector<16x80xf32>
    %c1 = arith.constant 1 : index
    %c0_7 = arith.constant 0 : index
    %c0_8 = arith.constant 0 : index
    %9 = vector.load %arg2[%c1, %c0_7, %c0_8] : memref<9x8x16xf32, #tpu.memory_space<vmem>>, vector<1x8x16xf32>
    %10 = vector.shape_cast %9 : vector<1x8x16xf32> to vector<8x16xf32>
    %cst_9 = arith.constant dense<0.000000e+00> : vector<8x80xf32>
    %11 = tpu.matmul %10, %8, %cst_9 {dimension_numbers = #tpu.dot_dimension_numbers<[1], [0], [0], [1], [0, 0, 1, 1], [], []>} : vector<8x16xf32>, vector<16x80xf32>, vector<8x80xf32> -> vector<8x80xf32>
    %12 = arith.addf %7, %11 : vector<8x80xf32>
    %13 = vector.extract_strided_slice %1 {offsets = [0, 2], sizes = [16, 80], strides = [1, 1]} : vector<16x110xf32> to vector<16x80xf32>
    %c2 = arith.constant 2 : index
    %c0_10 = arith.constant 0 : index
    %c0_11 = arith.constant 0 : index
    %14 = vector.load %arg2[%c2, %c0_10, %c0_11] : memref<9x8x16xf32, #tpu.memory_space<vmem>>, vector<1x8x16xf32>
    %15 = vector.shape_cast %14 : vector<1x8x16xf32> to vector<8x16xf32>
    %cst_12 = arith.constant dense<0.000000e+00> : vector<8x80xf32>
    %16 = tpu.matmul %15, %13, %cst_12 {dimension_numbers = #tpu.dot_dimension_numbers<[1], [0], [0], [1], [0, 0, 1, 1], [], []>} : vector<8x16xf32>, vector<16x80xf32>, vector<8x80xf32> -> vector<8x80xf32>
    %17 = arith.addf %12, %16 : vector<8x80xf32>
    %18 = vector.extract_strided_slice %1 {offsets = [0, 10], sizes = [16, 80], strides = [1, 1]} : vector<16x110xf32> to vector<16x80xf32>
    %c3 = arith.constant 3 : index
    %c0_13 = arith.constant 0 : index
    %c0_14 = arith.constant 0 : index
    %19 = vector.load %arg2[%c3, %c0_13, %c0_14] : memref<9x8x16xf32, #tpu.memory_space<vmem>>, vector<1x8x16xf32>
    %20 = vector.shape_cast %19 : vector<1x8x16xf32> to vector<8x16xf32>
    %cst_15 = arith.constant dense<0.000000e+00> : vector<8x80xf32>
    %21 = tpu.matmul %20, %18, %cst_15 {dimension_numbers = #tpu.dot_dimension_numbers<[1], [0], [0], [1], [0, 0, 1, 1], [], []>} : vector<8x16xf32>, vector<16x80xf32>, vector<8x80xf32> -> vector<8x80xf32>
    %22 = arith.addf %17, %21 : vector<8x80xf32>
    %23 = vector.extract_strided_slice %1 {offsets = [0, 11], sizes = [16, 80], strides = [1, 1]} : vector<16x110xf32> to vector<16x80xf32>
    %c4 = arith.constant 4 : index
    %c0_16 = arith.constant 0 : index
    %c0_17 = arith.constant 0 : index
    %24 = vector.load %arg2[%c4, %c0_16, %c0_17] : memref<9x8x16xf32, #tpu.memory_space<vmem>>, vector<1x8x16xf32>
    %25 = vector.shape_cast %24 : vector<1x8x16xf32> to vector<8x16xf32>
    %cst_18 = arith.constant dense<0.000000e+00> : vector<8x80xf32>
    %26 = tpu.matmul %25, %23, %cst_18 {dimension_numbers = #tpu.dot_dimension_numbers<[1], [0], [0], [1], [0, 0, 1, 1], [], []>} : vector<8x16xf32>, vector<16x80xf32>, vector<8x80xf32> -> vector<8x80xf32>
    %27 = arith.addf %22, %26 : vector<8x80xf32>
    %28 = vector.extract_strided_slice %1 {offsets = [0, 12], sizes = [16, 80], strides = [1, 1]} : vector<16x110xf32> to vector<16x80xf32>
    %c5 = arith.constant 5 : index
    %c0_19 = arith.constant 0 : index
    %c0_20 = arith.constant 0 : index
    %29 = vector.load %arg2[%c5, %c0_19, %c0_20] : memref<9x8x16xf32, #tpu.memory_space<vmem>>, vector<1x8x16xf32>
    %30 = vector.shape_cast %29 : vector<1x8x16xf32> to vector<8x16xf32>
    %cst_21 = arith.constant dense<0.000000e+00> : vector<8x80xf32>
    %31 = tpu.matmul %30, %28, %cst_21 {dimension_numbers = #tpu.dot_dimension_numbers<[1], [0], [0], [1], [0, 0, 1, 1], [], []>} : vector<8x16xf32>, vector<16x80xf32>, vector<8x80xf32> -> vector<8x80xf32>
    %32 = arith.addf %27, %31 : vector<8x80xf32>
    %33 = vector.extract_strided_slice %1 {offsets = [0, 20], sizes = [16, 80], strides = [1, 1]} : vector<16x110xf32> to vector<16x80xf32>
    %c6 = arith.constant 6 : index
    %c0_22 = arith.constant 0 : index
    %c0_23 = arith.constant 0 : index
    %34 = vector.load %arg2[%c6, %c0_22, %c0_23] : memref<9x8x16xf32, #tpu.memory_space<vmem>>, vector<1x8x16xf32>
    %35 = vector.shape_cast %34 : vector<1x8x16xf32> to vector<8x16xf32>
    %cst_24 = arith.constant dense<0.000000e+00> : vector<8x80xf32>
    %36 = tpu.matmul %35, %33, %cst_24 {dimension_numbers = #tpu.dot_dimension_numbers<[1], [0], [0], [1], [0, 0, 1, 1], [], []>} : vector<8x16xf32>, vector<16x80xf32>, vector<8x80xf32> -> vector<8x80xf32>
    %37 = arith.addf %32, %36 : vector<8x80xf32>
    %38 = vector.extract_strided_slice %1 {offsets = [0, 21], sizes = [16, 80], strides = [1, 1]} : vector<16x110xf32> to vector<16x80xf32>
    %c7 = arith.constant 7 : index
    %c0_25 = arith.constant 0 : index
    %c0_26 = arith.constant 0 : index
    %39 = vector.load %arg2[%c7, %c0_25, %c0_26] : memref<9x8x16xf32, #tpu.memory_space<vmem>>, vector<1x8x16xf32>
    %40 = vector.shape_cast %39 : vector<1x8x16xf32> to vector<8x16xf32>
    %cst_27 = arith.constant dense<0.000000e+00> : vector<8x80xf32>
    %41 = tpu.matmul %40, %38, %cst_27 {dimension_numbers = #tpu.dot_dimension_numbers<[1], [0], [0], [1], [0, 0, 1, 1], [], []>} : vector<8x16xf32>, vector<16x80xf32>, vector<8x80xf32> -> vector<8x80xf32>
    %42 = arith.addf %37, %41 : vector<8x80xf32>
    %43 = vector.extract_strided_slice %1 {offsets = [0, 22], sizes = [16, 80], strides = [1, 1]} : vector<16x110xf32> to vector<16x80xf32>
    %c8 = arith.constant 8 : index
    %c0_28 = arith.constant 0 : index
    %c0_29 = arith.constant 0 : index
    %44 = vector.load %arg2[%c8, %c0_28, %c0_29] : memref<9x8x16xf32, #tpu.memory_space<vmem>>, vector<1x8x16xf32>
    %45 = vector.shape_cast %44 : vector<1x8x16xf32> to vector<8x16xf32>
    %cst_30 = arith.constant dense<0.000000e+00> : vector<8x80xf32>
    %46 = tpu.matmul %45, %43, %cst_30 {dimension_numbers = #tpu.dot_dimension_numbers<[1], [0], [0], [1], [0, 0, 1, 1], [], []>} : vector<8x16xf32>, vector<16x80xf32>, vector<8x80xf32> -> vector<8x80xf32>
    %47 = arith.addf %42, %46 : vector<8x80xf32>
    %c0_31 = arith.constant 0 : index
    %c0_32 = arith.constant 0 : index
    %48 = vector.load %arg3[%c0_31, %c0_32] : memref<8x1xf32, #tpu.memory_space<vmem>>, vector<8x1xf32>
    %49 = vector.broadcast %48 : vector<8x1xf32> to vector<8x80xf32>
    %50 = arith.addf %47, %49 : vector<8x80xf32>
    %cst_33 = arith.constant 0.000000e+00 : f32
    %51 = vector.broadcast %cst_33 : f32 to vector<8x80xf32>
    %52 = arith.cmpf ogt, %50, %51 : vector<8x80xf32>
    %cst_34 = arith.constant 2.000000e-01 : f32
    %53 = vector.broadcast %cst_34 : f32 to vector<8x80xf32>
    %54 = arith.mulf %53, %50 : vector<8x80xf32>
    %55 = arith.select %52, %50, %54 : vector<8x80xi1>, vector<8x80xf32>
    %c0_35 = arith.constant 0 : index
    %c0_36 = arith.constant 0 : index
    %c0_37 = arith.constant 0 : index
    %c0_38 = arith.constant 0 : index
    %56 = vector.load %arg5[%c0_35, %c0_36, %c0_37, %c0_38] : memref<1x1x8x80xf32, #tpu.memory_space<vmem>>, vector<1x1x8x80xf32>
    %57 = vector.shape_cast %56 : vector<1x1x8x80xf32> to vector<8x80xf32>
    %58 = vector.shape_cast %55 : vector<8x80xf32> to vector<1x1x8x80xf32>
    tpu.vector_store %arg5[%c0_35, %c0_36, %c0_37, %c0_38], %58 {strides = array<i32>} : memref<1x1x8x80xf32, #tpu.memory_space<vmem>>, vector<1x1x8x80xf32>,
    return
  }
  func.func @transform_0(%arg0: i32, %arg1: i32) -> (i32, i32, i32) {
    %c0_i32 = arith.constant 0 : i32
    %c0_i32_0 = arith.constant 0 : i32
    %c0_i32_1 = arith.constant 0 : i32
    %c0_i32_2 = arith.constant 0 : i32
    return %c0_i32, %c0_i32_0, %c0_i32_1 : i32, i32, i32
  }
  func.func @transform_1(%arg0: i32, %arg1: i32) -> (i32, i32) {
    %c0_i32 = arith.constant 0 : i32
    %c0_i32_0 = arith.constant 0 : i32
    %c0_i32_1 = arith.constant 0 : i32
    return %c0_i32, %c0_i32_0 : i32, i32
  }
  func.func @transform_2(%arg0: i32, %arg1: i32) -> (i32, i32, i32, i32) {
    %c0_i32 = arith.constant 0 : i32
    %c0_i32_0 = arith.constant 0 : i32
    %c0_i32_1 = arith.constant 0 : i32
    return %arg0, %arg1, %c0_i32, %c0_i32_0 : i32, i32, i32, i32
  }
  func.func @transform_3(%arg0: i32, %arg1: i32) -> (i32, i32, i32, i32) {
    %c0_i32 = arith.constant 0 : i32
    %c0_i32_0 = arith.constant 0 : i32
    %c0_i32_1 = arith.constant 0 : i32
    return %arg0, %arg1, %c0_i32, %c0_i32_0 : i32, i32, i32, i32
  }
}

</mosaic_0001>

<bundles_post_ra>
// kernel: down_block_forward.1
= control target key start
LH: loop header
LB: loop body
LE: loop exit
PB: predicated region body
PF: predicated region fallthrough
CT: control target
= control target key end

     0   :  { %s1238_s12 = smov 0   ;;  %s1240_s13 = smov 0   ;;  %s1350_s0 = inlined_call_operand.vmem [shape: f32[9,8,16], index: 0, kind: input, shape index: {}]   ;;  %s1351_s1 = inlined_call_operand.vmem [shape: f32[8,1], index: 1, kind: input, shape index: {}]   ;;  %s1352_s2 = inlined_call_operand.vmem [shape: f32[2,1,16,110], index: 2, kind: input, shape index: {}]   ;;  %s1353_s3 = inlined_call_operand.vmem [shape: f32[2,1,8,80], index: 3, kind: output, shape index: {}]  }
   0x1   :  { %s1242_s14 = smov 0  }
   0x2 LB: > { %s25_s15 = sadd.s32 1, %s1201_s13  ;;  %p1033_p0 = scmp.ge.s32.totalorder %s1205_s14, 1  ;;  %s1205_s14 = sphi %s1242_s14, %s13_s14   ;;  %s1201_s13 = sphi %s1240_s13, %s1355_s13   ;;  %s1197_s12 = sphi %s1238_s12, %s1354_s12  }
   0x3   : > { %p27_p1 = scmp.ge.s32.totalorder %s25_s15, 2  ;;  %p157_p2 = scmp.lt.s32.totalorder %s1205_s14, 3 }
   0x5   : > { %s1357_s15 = smov (%p27_p1, %s25_s15), 0  ;;  %p158_p3 = pnand %p1033_p0, %p157_p2 }
   0x6   : > { %p187_p4 = scmp.lt.s32.totalorder (!%p158_p3), %s1197_s12, 1  ;;  %s1209_s20 = smov (!%p158_p3), 127  }
   0x7   : > { %161 = sbr.rel (%p158_p3) target bundleno = 363 (0x16b), region = 32  ;;  %s1210_s21 = smov (!%p158_p3), 126  }
   0x8   : > { %s1211_s24 = smov (!%p158_p3), 118   ;;  %s1212_s25 = smov (!%p158_p3), 117  }
   0x9   : > { %s1213_s26 = smov (!%p158_p3), 116   ;;  %s1215_s27 = smov (!%p158_p3), 108  }
   0xa   : > { %s1216_s28 = smov (!%p158_p3), 107   ;;  %s1217_s29 = smov (!%p158_p3), 106  }
   0xc   : > { %v1207_v0 = vmov 0.0   ;;  %s1359_s12 = smov (!%p187_p4, %s1197_s12), 1  ;;  %vm1208_vm0 = vmmov 0   ;;  %v205_v3 = vld [vmem:[%s1350_s0] sm:$0xff]  ;;  %vm216_vm1 = vcmask 130048   ;;  %v1214_v4 = vmov 0  }
   0xd   : > { %1084 = vmatprep.subr.mxu0 %v1207_v0  ;;  %1091 = vmatprep.subr.mxu1 %v1207_v0  ;;  %s1056_s16 = sshll.u32 %s1359_s12, 4  ;;  %v937_v5 = vld [vmem:[%s1351_s1] sm:$0xff]  ;;  %v1037_v8 = vld [vmem:[%s1350_s0 + $0x8] sm:$0xff]  ;;  %v1040_v13 = vld [vmem:[%s1350_s0 + $0x10] sm:$0xff]  ;;  %vm947_vm2 = vcmask 654336  }
   0xe   : > { %1088 = vmatprep.mubr.msk.f32.mxu0 %vm1208_vm0, %v1207_v0  ;;  %1095 = vmatprep.mubr.msk.f32.mxu1 %vm1208_vm0, %v1207_v0  ;;  %s195_s19 = scalar_lea.vmem %s1352_s2, %s1056_s16  ;;  %v1042_v14 = vld [vmem:[%s1350_s0 + $0x18] sm:$0xff]  ;;  %v1044_v17 = vld [vmem:[%s1350_s0 + $0x20] sm:$0xff]  ;;  %v1046_v20 = vld [vmem:[%s1350_s0 + $0x28] sm:$0xff] }
   0xf   : > { %v204_v1 = vld [vmem:[%s195_s19 + $0x8] sm:$0xff]  ;;  %v203_v2 = vld [vmem:[%s195_s19] sm:$0xff]  ;;  %1182 = vset.pattern.permute.xlu0 %v1214_v4  ;;  %v1048_v23 = vld [vmem:[%s1350_s0 + $0x30] sm:$0xff] }
  0x10   : > { %212 = vrot.lane.b32.xlu0 %v204_v1, %s1209_s20  ;;  %367 = vrot.lane.b32.xlu1 %v204_v1, %s1210_s21  ;;  %v1050_v26 = vld [vmem:[%s1350_s0 + $0x38] sm:$0xff]  ;;  %v1052_v29 = vld [vmem:[%s1350_s0 + $0x40] sm:$0xff] }
  0x11   : > { %1092 = vmatpush3.msra.mxu1 %v204_v1 }
  0x12   : > { %1093 = vmatprep.subr.mxu1 %v1207_v0 }
  0x13   : > { %1094 = vmatpush3.msra.mxu1 %v203_v2 }
  0x14   : > { %210 = vrot.lane.b32.xlu0 %v203_v2, %s1209_s20  ;;  %365 = vrot.lane.b32.xlu1 %v203_v2, %s1210_s21 }
  0x15   : > { %1105 = vmatprep.subr.mxu1 %v1207_v0  ;;  %1096 = vmatmul.mubr.msk.f32.vlgmr.msra.gmra.mxu1 %vm216_vm1, %v205_v3 }
  0x16   : > { %1109 = vmatprep.mubr.msk.f32.mxu1 %vm1208_vm0, %v1207_v0 }
  0x18   : > { %449 = vrot.lane.b32.xlu0 %v204_v1, %s1211_s24  ;;  %447 = vrot.lane.b32.xlu1 %v203_v2, %s1211_s24 }
  0x1c   : > { %531 = vrot.lane.b32.xlu0 %v204_v1, %s1212_s25  ;;  %529 = vrot.lane.b32.xlu1 %v203_v2, %s1212_s25  ;;  %s1036_s25 = sshll.u32 %s1359_s12, 3 }
  0x20   : > { %613 = vrot.lane.b32.xlu0 %v204_v1, %s1213_s26  ;;  %611 = vrot.lane.b32.xlu1 %v203_v2, %s1213_s26 }
  0x24   : > { %695 = vrot.lane.b32.xlu0 %v204_v1, %s1215_s27  ;;  %693 = vrot.lane.b32.xlu1 %v203_v2, %s1215_s27 }
  0x28   : > { %777 = vrot.lane.b32.xlu0 %v204_v1, %s1216_s28  ;;  %775 = vrot.lane.b32.xlu1 %v203_v2, %s1216_s28  ;;  %s202_s28 = scalar_lea.vmem %s1353_s3, %s1036_s25 }
  0x2c   : > { %859 = vrot.lane.b32.xlu0 %v204_v1, %s1217_s29  ;;  %857 = vrot.lane.b32.xlu1 %v203_v2, %s1217_s29 }
  0x30   : > { %940 = vperm.xlu0 %1182, %v937_v5  }
  0x82   : > { %v213_v6 = vpop.permute.xlu0 %212  ;;  %v368_v7 = vpop.permute.xlu1 %367 }
  0x83   : > { %1085 = vmatpush3.msra.mxu0 %v213_v6 }
  0x84   : > { %1086 = vmatprep.subr.mxu0 %v1207_v0 }
  0x86   : > { %v211_v9 = vpop.permute.xlu0 %210  ;;  %v366_v10 = vpop.permute.xlu1 %365 }
  0x87   : > { %1087 = vmatpush3.msra.mxu0 %v211_v9 }
  0x88   : > { %1098 = vmatprep.subr.mxu0 %v1207_v0  ;;  %1089 = vmatmul.mubr.msk.f32.vlgmr.msra.gmra.mxu0 %vm216_vm1, %v1037_v8 }
  0x89   : > { %1099 = vmatpush3.msra.mxu0 %v368_v7  ;;  %1102 = vmatprep.mubr.msk.f32.mxu0 %vm1208_vm0, %v1207_v0 }
  0x8a   : > { %1100 = vmatprep.subr.mxu0 %v1207_v0  ;;  %v450_v11 = vpop.permute.xlu0 %449  ;;  %v448_v12 = vpop.permute.xlu1 %447 }
  0x8b   : > { %1101 = vmatpush3.msra.mxu0 %v366_v10  ;;  %1106 = vmatpush3.msra.mxu1 %v450_v11 }
  0x8c   : > { %1107 = vmatprep.subr.mxu1 %v1207_v0  ;;  %1112 = vmatprep.subr.mxu0 %v1207_v0 }
  0x8d   : > { %1108 = vmatpush3.msra.mxu1 %v448_v12  ;;  %1103 = vmatmul.mubr.msk.f32.vlgmr.msra.gmra.mxu0 %vm216_vm1, %v1040_v13 }
  0x8e   : > { %v532_v15 = vpop.permute.xlu0 %531  ;;  %v530_v16 = vpop.permute.xlu1 %529  ;;  %1119 = vmatprep.subr.mxu1 %v1207_v0  ;;  %1110 = vmatmul.mubr.msk.f32.vlgmr.msra.gmra.mxu1 %vm216_vm1, %v1042_v14 }
  0x8f   : > { %1113 = vmatpush3.msra.mxu0 %v532_v15  ;;  %1116 = vmatprep.mubr.msk.f32.mxu0 %vm1208_vm0, %v1207_v0 }
  0x90   : > { %1114 = vmatprep.subr.mxu0 %v1207_v0  ;;  %1123 = vmatprep.mubr.msk.f32.mxu1 %vm1208_vm0, %v1207_v0 }
  0x91   : > { %1115 = vmatpush3.msra.mxu0 %v530_v16 }
  0x92   : > { %v614_v18 = vpop.permute.xlu0 %613  ;;  %v612_v19 = vpop.permute.xlu1 %611  ;;  %1126 = vmatprep.subr.mxu0 %v1207_v0  ;;  %1117 = vmatmul.mubr.msk.f32.vlgmr.msra.gmra.mxu0 %vm216_vm1, %v1044_v17 }
  0x93   : > { %1120 = vmatpush3.msra.mxu1 %v614_v18  ;;  %1130 = vmatprep.mubr.msk.f32.mxu0 %vm1208_vm0, %v1207_v0 }
  0x94   : > { %1121 = vmatprep.subr.mxu1 %v1207_v0 }
  0x95   : > { %1122 = vmatpush3.msra.mxu1 %v612_v19 }
  0x96   : > { %v696_v21 = vpop.permute.xlu0 %695  ;;  %v694_v22 = vpop.permute.xlu1 %693  ;;  %1133 = vmatprep.subr.mxu1 %v1207_v0  ;;  %1124 = vmatmul.mubr.msk.f32.vlgmr.msra.gmra.mxu1 %vm216_vm1, %v1046_v20 }
  0x97   : > { %1127 = vmatpush3.msra.mxu0 %v696_v21  ;;  %1137 = vmatprep.mubr.msk.f32.mxu1 %vm1208_vm0, %v1207_v0 }
  0x98   : > { %1128 = vmatprep.subr.mxu0 %v1207_v0 }
  0x99   : > { %1129 = vmatpush3.msra.mxu0 %v694_v22 }
  0x9a   : > { %v778_v24 = vpop.permute.xlu0 %777  ;;  %v776_v25 = vpop.permute.xlu1 %775  ;;  %1131 = vmatmul.mubr.msk.f32.vlgmr.msra.gmra.mxu0 %vm216_vm1, %v1048_v23  ;;  %1140 = vmatprep.subr.mxu0 %v1207_v0 }
  0x9b   : > { %1134 = vmatpush3.msra.mxu1 %v778_v24  ;;  %1144 = vmatprep.mubr.msk.f32.mxu0 %vm1208_vm0, %v1207_v0 }
  0x9c   : > { %1135 = vmatprep.subr.mxu1 %v1207_v0 }
  0x9d   : > { %1136 = vmatpush3.msra.mxu1 %v776_v25 }
  0x9e   : > { %v860_v27 = vpop.permute.xlu0 %859  ;;  %1138 = vmatmul.mubr.msk.f32.vlgmr.msra.gmra.mxu1 %vm216_vm1, %v1050_v26  ;;  %v858_v28 = vpop.permute.xlu1 %857 }
  0x9f   : > { %1141 = vmatpush3.msra.mxu0 %v860_v27 }
  0xa0   : > { %1142 = vmatprep.subr.mxu0 %v1207_v0 }
  0xa1   : > { %1143 = vmatpush3.msra.mxu0 %v858_v28 }
  0xa2   : > { %1145 = vmatmul.mubr.msk.f32.vlgmr.msra.gmra.mxu0 %vm216_vm1, %v1052_v29 }
  0xab   : > { %v941_v54 = vpop.permute.xlu0 %940 }
  0xd5   : > { %v359_v30 = vpop.f32.mrf.mxu1 }
  0xd7   : > { %v1097_v31 = vpop.f32.mrf.mxu1 }
 0x148   : > { %v286_v32 = vpop.f32.mrf.mxu0 }
 0x149   : > { %v360_v34 = vadd.f32 %v359_v30, %v286_v32 }
 0x14a   : > { %v1090_v33 = vpop.f32.mrf.mxu0 }
 0x14d   : > { %v440_v35 = vpop.f32.mrf.mxu0 }
 0x14e   : > { %v444_v36 = vadd.f32 %v440_v35, %v360_v34  ;;  %v522_v37 = vpop.f32.mrf.mxu1 }
 0x14f   : > { %v1104_v38 = vpop.f32.mrf.mxu0 }
 0x150   : > { %v1111_v39 = vpop.f32.mrf.mxu1  ;;  %v526_v40 = vadd.f32 %v522_v37, %v444_v36 }
 0x152   : > { %v604_v41 = vpop.f32.mrf.mxu0 }
 0x153   : > { %v608_v43 = vadd.f32 %v604_v41, %v526_v40 }
 0x154   : > { %v1118_v42 = vpop.f32.mrf.mxu0 }
 0x156   : > { %v686_v44 = vpop.f32.mrf.mxu1 }
 0x157   : > { %v690_v46 = vadd.f32 %v686_v44, %v608_v43 }
 0x158   : > { %v1125_v45 = vpop.f32.mrf.mxu1 }
 0x15a   : > { %v768_v47 = vpop.f32.mrf.mxu0 }
 0x15b   : > { %v772_v49 = vadd.f32 %v768_v47, %v690_v46 }
 0x15c   : > { %v1132_v48 = vpop.f32.mrf.mxu0 }
 0x15e   : > { %v850_v50 = vpop.f32.mrf.mxu1 }
 0x15f   : > { %v854_v52 = vadd.f32 %v850_v50, %v772_v49 }
 0x160   : > { %v1139_v51 = vpop.f32.mrf.mxu1 }
 0x162   : > { %v932_v53 = vpop.f32.mrf.mxu0 }
 0x163   : > { %v936_v55 = vadd.f32 %v932_v53, %v854_v52 }
 0x164   : > { %v1146_v56 = vpop.f32.mrf.mxu0 }
 0x165   : > { %v943_v57 = vadd.f32 %v941_v54, %v936_v55 }
 0x167   : > { %vm944_vm3 = vcmp.gt.f32.partialorder %v943_v57, 0.0  ;;  %v945_v58 = vmul.f32 0.2, %v943_v57 }
 0x169   : > { %v946_v59 = vsel %vm944_vm3, %v943_v57, %v945_v58 }
 0x16a   : > { %948 = vst.msk [vmem:[%s202_s28] sm:$0xff] %vm947_vm2, %v946_v59 }
 0x16b PF: > { %s13_s14 = sadd.s32 1, %s1205_s14   ;;  %s1354_s12 = smov %s1201_s13 }
 0x16c   : > { %p10_p5 = scmp.ge.s32.totalorder %s13_s14, 4   ;;  %s1355_s13 = smov %s1357_s15 }
 0x16e   :  { %12 = sbr.rel (!%p10_p5) target bundleno = 2 (0x2), region = 70 }

</bundles_post_ra>
